<compile_context>
chip_gen: v7x
topology: tpu7x:2x2x1
jax: 0.10.0
libtpu: 0.0.40
codegen_flags: <defaults>
</compile_context>

<pallas_src>
import functools

import jax
import jax.numpy as jnp
from jax.experimental import pallas as pl
from jax.experimental.pallas import tpu as pltpu


def _round_up(x, m):
    return (x + m - 1) // m * m


def gru_chunk_kernel(xi_ref, whh_ref, bhn_ref, out_ref, h_ref):
    """Runs TT GRU timesteps for one (batch_tile, time_chunk) grid point.

    xi_ref : (TT, TB, 3*Hp) f32  precomputed x@W_i* with b_ir+b_hr | b_iz+b_hz | b_in added
    whh_ref: (Hp, 3*Hp)     bf16 fused [W_hr^T | W_hz^T | W_hn^T]
    bhn_ref: (1, Hp)        f32  b_hn (must stay inside r * (...))
    out_ref: (TT, TB, Hp)   f32  hidden states for this chunk
    h_ref  : (TB, Hp)       f32  VMEM scratch carrying h across time chunks
    """
    c = pl.program_id(1)  # time-chunk index; sequential ("arbitrary") axis

    @pl.when(c == 0)
    def _():
        h_ref[...] = jnp.zeros_like(h_ref)  # PyTorch default h0 = zeros

    whh = whh_ref[...]  # resident for the whole chunk (constant weights)
    bhn = bhn_ref[...]
    hp = whh_ref.shape[0]
    tt = xi_ref.shape[0]

    def step(t, h):
        xi = xi_ref[t]  # (TB, 3*Hp) f32
        hh = jnp.dot(h.astype(whh.dtype), whh,
                     preferred_element_type=jnp.float32)  # one fused MXU matmul / step
        r = jax.nn.sigmoid(xi[:, :hp] + hh[:, :hp])
        z = jax.nn.sigmoid(xi[:, hp:2 * hp] + hh[:, hp:2 * hp])
        n = jnp.tanh(xi[:, 2 * hp:] + r * (hh[:, 2 * hp:] + bhn))
        h_new = (1.0 - z) * n + z * h
        out_ref[t] = h_new.astype(out_ref.dtype)
        return h_new

    h_ref[...] = jax.lax.fori_loop(0, tt, step, h_ref[...], unroll=True)


@functools.partial(jax.jit, static_argnames=("time_chunk",))
def rnn_listener_forward(batch_feature, batch_embedding, params, *, time_chunk=8):
    """batch_feature: (B, T, F), batch_embedding: (B, T, E) -> (B, T, H)."""
    f32, bf16 = jnp.float32, jnp.bfloat16

    inputs = jnp.concatenate([batch_feature, batch_embedding], axis=2)  # (B, T, D)
    B, T, D = inputs.shape
    H = params["w_hr"].shape[0]

    Hp = _round_up(H, 128)   # lane-dense hidden width (unmasked stores)
    Bp = _round_up(B, 8)     # full sublanes / MXU rows
    TT = time_chunk
    Tpad = _round_up(T, TT)
    TB = Bp                  # one batch tile here; >1 tiles map onto v7x's 2 TCs
    G = 3 * Hp

    # ---- fused + padded parameters (padding lanes/rows are exactly zero) ----
    wih = jnp.zeros((D, G), f32)
    wih = wih.at[:, 0 * Hp:0 * Hp + H].set(params["w_ir"].T.astype(f32))
    wih = wih.at[:, 1 * Hp:1 * Hp + H].set(params["w_iz"].T.astype(f32))
    wih = wih.at[:, 2 * Hp:2 * Hp + H].set(params["w_in"].T.astype(f32))

    bi = jnp.zeros((G,), f32)
    bi = bi.at[0 * Hp:0 * Hp + H].set(params["b_ir"] + params["b_hr"])  # foldable
    bi = bi.at[1 * Hp:1 * Hp + H].set(params["b_iz"] + params["b_hz"])  # foldable
    bi = bi.at[2 * Hp:2 * Hp + H].set(params["b_in"])                   # b_hn stays separate

    whh = jnp.zeros((Hp, G), f32)
    whh = whh.at[:H, 0 * Hp:0 * Hp + H].set(params["w_hr"].T.astype(f32))
    whh = whh.at[:H, 1 * Hp:1 * Hp + H].set(params["w_hz"].T.astype(f32))
    whh = whh.at[:H, 2 * Hp:2 * Hp + H].set(params["w_hn"].T.astype(f32))

    bhn = jnp.zeros((1, Hp), f32).at[0, :H].set(params["b_hn"])

    # ---- hoisted input projection: ONE big GEMM over all Tpad*Bp rows ----
    x_tm = jnp.transpose(inputs, (1, 0, 2)).astype(f32)           # (T, B, D) time-major
    x_tm = jnp.pad(x_tm, ((0, Tpad - T), (0, Bp - B), (0, 0)))
    xi = jnp.dot(x_tm.reshape(Tpad * Bp, D).astype(bf16), wih.astype(bf16),
                 preferred_element_type=f32) + bi                 # (Tpad*Bp, 3*Hp) f32
    xi = xi.reshape(Tpad, Bp, G)

    grid = (Bp // TB, Tpad // TT)
    out_tm = pl.pallas_call(
        gru_chunk_kernel,
        out_shape=jax.ShapeDtypeStruct((Tpad, Bp, Hp), f32),
        grid_spec=pltpu.PrefetchScalarGridSpec(
            num_scalar_prefetch=0,
            grid=grid,
            in_specs=[
                pl.BlockSpec((TT, TB, G), lambda b, c: (c, b, 0)),   # Xi chunk
                # Constant-index weights; at production H, single-buffer these
                # (pl.Buffered(1)) on v7x to cut VMEM. Kept default-buffered here
                # for portability.
                pl.BlockSpec((Hp, G), lambda b, c: (0, 0)),          # fused W_hh
                pl.BlockSpec((1, Hp), lambda b, c: (0, 0)),          # b_hn
            ],
            out_specs=pl.BlockSpec((TT, TB, Hp), lambda b, c: (c, b, 0)),
            scratch_shapes=[pltpu.VMEM((TB, Hp), f32)],              # carried h
        ),
        compiler_params=pltpu.CompilerParams(
            dimension_semantics=("parallel", "arbitrary"),  # batch parallel, time sequential
            vmem_limit_bytes=32 * 1024 * 1024,
        ),
    )(xi, whh.astype(bf16), bhn)

    # strip padding, back to PyTorch batch_first layout
    return jnp.transpose(out_tm[:T, :B, :H], (1, 0, 2))


def init_gru_params(key, in_dim, hi_dim):
    """Deterministic init mirroring nn.GRU: U(-1/sqrt(H), 1/sqrt(H))."""
    bound = 1.0 / jnp.sqrt(jnp.float32(hi_dim))
    ks = jax.random.split(key, 12)
    u = lambda k, shape: jax.random.uniform(k, shape, jnp.float32, -bound, bound)
    return {
        "w_ir": u(ks[0], (hi_dim, in_dim)),
        "w_iz": u(ks[1], (hi_dim, in_dim)),
        "w_in": u(ks[2], (hi_dim, in_dim)),
        "w_hr": u(ks[3], (hi_dim, hi_dim)),
        "w_hz": u(ks[4], (hi_dim, hi_dim)),
        "w_hn": u(ks[5], (hi_dim, hi_dim)),
        "b_ir": u(ks[6], (hi_dim,)),
        "b_iz": u(ks[7], (hi_dim,)),
        "b_in": u(ks[8], (hi_dim,)),
        "b_hr": u(ks[9], (hi_dim,)),
        "b_hz": u(ks[10], (hi_dim,)),
        "b_hn": u(ks[11], (hi_dim,)),
    }


def gru_reference(inputs, params):
    """Pure-JAX f32 GRU reference (lax.scan) for validation."""
    B, T, D = inputs.shape
    H = params["w_hr"].shape[0]
    h0 = jnp.zeros((B, H), jnp.float32)

    def step(h, x_t):
        i_r = x_t @ params["w_ir"].T + params["b_ir"]
        i_z = x_t @ params["w_iz"].T + params["b_iz"]
        i_n = x_t @ params["w_in"].T + params["b_in"]
        h_r = h @ params["w_hr"].T + params["b_hr"]
        h_z = h @ params["w_hz"].T + params["b_hz"]
        h_n = h @ params["w_hn"].T + params["b_hn"]
        r = jax.nn.sigmoid(i_r + h_r)
        z = jax.nn.sigmoid(i_z + h_z)
        n = jnp.tanh(i_n + r * h_n)
        h_new = (1.0 - z) * n + z * h
        return h_new, h_new

    xs = jnp.transpose(inputs, (1, 0, 2)).astype(jnp.float32)
    _, ys = jax.lax.scan(step, h0, xs)
    return jnp.transpose(ys, (1, 0, 2))


if __name__ == "__main__":
    # Small shapes consistent with the module's forward:
    #   batch_feature: (B, T, F), batch_embedding: (B, T, E); in_dim = F + E, hi_dim = H
    B, T, F, E, H = 2, 8, 24, 8, 32
    key = jax.random.PRNGKey(0)
    kf, ke, kp = jax.random.split(key, 3)

    batch_feature = jax.random.normal(kf, (B, T, F), jnp.float32)
    batch_embedding = jax.random.normal(ke, (B, T, E), jnp.float32)
    params = init_gru_params(kp, F + E, H)

    # time_chunk=4 exercises the cross-chunk hidden-state carry (grid = (1, 2)).
    out = rnn_listener_forward(batch_feature, batch_embedding, params, time_chunk=4)
    out = jax.block_until_ready(out)

    ref = gru_reference(jnp.concatenate([batch_feature, batch_embedding], 2), params)
    assert out.shape == (B, T, H)
    # bf16 MXU inputs (f32 accumulation) vs f32 reference -> loose-ish tolerance.
    assert jnp.allclose(out, ref, atol=5e-2, rtol=5e-2), (
        f"mismatch vs reference: max abs err {jnp.max(jnp.abs(out - ref))}")

    print("KERNEL_OK")
</pallas_src>

<mosaic_0001>
module attributes {stable_mosaic.version = 11 : i64} {
  func.func @gru_chunk_kernel(%arg0: i32, %arg1: i32, %arg2: memref<4x8x384xf32, #tpu.memory_space<vmem>>, %arg3: memref<128x384xbf16, #tpu.memory_space<vmem>>, %arg4: memref<1x128xf32, #tpu.memory_space<vmem>>, %arg5: memref<4x8x128xf32, #tpu.memory_space<vmem>>, %arg6: memref<8x128xf32, #tpu.memory_space<vmem>>) attributes {dimension_semantics = [#tpu.dimension_semantics<parallel>, #tpu.dimension_semantics<arbitrary>], iteration_bounds = array<i64: 1, 2>, scalar_prefetch = 0 : i64, scratch_operands = 1 : i64, tpu.core_type = #tpu.core_type<tc>, window_params = [{transform_indices = @transform_0, window_bounds = array<i64: 4, 8, 384>}, {pipeline_mode = #tpu.pipeline_mode<synchronous>, transform_indices = @transform_1, window_bounds = array<i64: 128, 384>}, {pipeline_mode = #tpu.pipeline_mode<synchronous>, transform_indices = @transform_2, window_bounds = array<i64: 1, 128>}, {transform_indices = @transform_3, window_bounds = array<i64: 4, 8, 128>}]} {
    %c0_i32 = arith.constant 0 : i32
    %0 = arith.cmpi eq, %arg1, %c0_i32 : i32
    %1 = arith.extui %0 : i1 to i32
    %c0_i32_0 = arith.constant 0 : i32
    %2 = arith.cmpi ne, %1, %c0_i32_0 : i32
    scf.if %2 {
      %cst_40 = arith.constant 0.000000e+00 : f32
      %155 = vector.broadcast %cst_40 : f32 to vector<8x128xf32>
      %c0_41 = arith.constant 0 : index
      %c0_42 = arith.constant 0 : index
      %156 = vector.load %arg6[%c0_41, %c0_42] : memref<8x128xf32, #tpu.memory_space<vmem>>, vector<8x128xf32>
      tpu.vector_store %arg6[%c0_41, %c0_42], %155 {strides = array<i32>} : memref<8x128xf32, #tpu.memory_space<vmem>>, vector<8x128xf32>,
    } else {
    }
    %c0 = arith.constant 0 : index
    %c0_1 = arith.constant 0 : index
    %3 = vector.load %arg3[%c0, %c0_1] : memref<128x384xbf16, #tpu.memory_space<vmem>>, vector<128x384xbf16>
    %c0_2 = arith.constant 0 : index
    %c0_3 = arith.constant 0 : index
    %4 = vector.load %arg4[%c0_2, %c0_3] : memref<1x128xf32, #tpu.memory_space<vmem>>, vector<1x128xf32>
    %c0_4 = arith.constant 0 : index
    %c0_5 = arith.constant 0 : index
    %5 = vector.load %arg6[%c0_4, %c0_5] : memref<8x128xf32, #tpu.memory_space<vmem>>, vector<8x128xf32>
    %c0_i32_6 = arith.constant 0 : i32
    %6 = arith.index_cast %c0_i32_6 : i32 to index
    %c0_7 = arith.constant 0 : index
    %c0_8 = arith.constant 0 : index
    %7 = vector.load %arg2[%6, %c0_7, %c0_8] : memref<4x8x384xf32, #tpu.memory_space<vmem>>, vector<1x8x384xf32>
    %8 = vector.shape_cast %7 : vector<1x8x384xf32> to vector<8x384xf32>
    %9 = arith.truncf %5 : vector<8x128xf32> to vector<8x128xbf16>
    %cst = arith.constant dense<0.000000e+00> : vector<8x384xf32>
    %10 = tpu.matmul %9, %3, %cst {dimension_numbers = #tpu.dot_dimension_numbers<[1], [0], [0], [1], [0, 0, 1, 1], [], []>} : vector<8x128xbf16>, vector<128x384xbf16>, vector<8x384xf32> -> vector<8x384xf32>
    %11 = vector.extract_strided_slice %8 {offsets = [0, 0], sizes = [8, 128], strides = [1, 1]} : vector<8x384xf32> to vector<8x128xf32>
    %12 = vector.extract_strided_slice %10 {offsets = [0, 0], sizes = [8, 128], strides = [1, 1]} : vector<8x384xf32> to vector<8x128xf32>
    %13 = arith.addf %11, %12 : vector<8x128xf32>
    %14 = arith.negf %13 : vector<8x128xf32>
    %15 = math.exp %14 : vector<8x128xf32>
    %cst_9 = arith.constant 1.000000e+00 : f32
    %16 = vector.broadcast %cst_9 : f32 to vector<8x128xf32>
    %17 = arith.addf %16, %15 : vector<8x128xf32>
    %18 = arith.divf %16, %17 : vector<8x128xf32>
    %19 = vector.extract_strided_slice %8 {offsets = [0, 128], sizes = [8, 128], strides = [1, 1]} : vector<8x384xf32> to vector<8x128xf32>
    %20 = vector.extract_strided_slice %10 {offsets = [0, 128], sizes = [8, 128], strides = [1, 1]} : vector<8x384xf32> to vector<8x128xf32>
    %21 = arith.addf %19, %20 : vector<8x128xf32>
    %22 = arith.negf %21 : vector<8x128xf32>
    %23 = math.exp %22 : vector<8x128xf32>
    %cst_10 = arith.constant 1.000000e+00 : f32
    %24 = vector.broadcast %cst_10 : f32 to vector<8x128xf32>
    %25 = arith.addf %24, %23 : vector<8x128xf32>
    %26 = arith.divf %24, %25 : vector<8x128xf32>
    %27 = vector.extract_strided_slice %8 {offsets = [0, 256], sizes = [8, 128], strides = [1, 1]} : vector<8x384xf32> to vector<8x128xf32>
    %28 = vector.extract_strided_slice %10 {offsets = [0, 256], sizes = [8, 128], strides = [1, 1]} : vector<8x384xf32> to vector<8x128xf32>
    %29 = vector.broadcast %4 : vector<1x128xf32> to vector<8x128xf32>
    %30 = arith.addf %28, %29 : vector<8x128xf32>
    %31 = arith.mulf %18, %30 : vector<8x128xf32>
    %32 = arith.addf %27, %31 : vector<8x128xf32>
    %33 = math.tanh %32 : vector<8x128xf32>
    %cst_11 = arith.constant 1.000000e+00 : f32
    %34 = vector.broadcast %cst_11 : f32 to vector<8x128xf32>
    %35 = arith.subf %34, %26 : vector<8x128xf32>
    %36 = arith.mulf %35, %33 : vector<8x128xf32>
    %37 = arith.mulf %26, %5 : vector<8x128xf32>
    %38 = arith.addf %36, %37 : vector<8x128xf32>
    %39 = arith.index_cast %c0_i32_6 : i32 to index
    %c0_12 = arith.constant 0 : index
    %c0_13 = arith.constant 0 : index
    %40 = vector.load %arg5[%39, %c0_12, %c0_13] : memref<4x8x128xf32, #tpu.memory_space<vmem>>, vector<1x8x128xf32>
    %41 = vector.shape_cast %40 : vector<1x8x128xf32> to vector<8x128xf32>
    %42 = vector.shape_cast %38 : vector<8x128xf32> to vector<1x8x128xf32>
    tpu.vector_store %arg5[%39, %c0_12, %c0_13], %42 {strides = array<i32>} : memref<4x8x128xf32, #tpu.memory_space<vmem>>, vector<1x8x128xf32>,
    %c1_i32 = arith.constant 1 : i32
    %43 = arith.index_cast %c1_i32 : i32 to index
    %c0_14 = arith.constant 0 : index
    %c0_15 = arith.constant 0 : index
    %44 = vector.load %arg2[%43, %c0_14, %c0_15] : memref<4x8x384xf32, #tpu.memory_space<vmem>>, vector<1x8x384xf32>
    %45 = vector.shape_cast %44 : vector<1x8x384xf32> to vector<8x384xf32>
    %46 = arith.truncf %38 : vector<8x128xf32> to vector<8x128xbf16>
    %cst_16 = arith.constant dense<0.000000e+00> : vector<8x384xf32>
    %47 = tpu.matmul %46, %3, %cst_16 {dimension_numbers = #tpu.dot_dimension_numbers<[1], [0], [0], [1], [0, 0, 1, 1], [], []>} : vector<8x128xbf16>, vector<128x384xbf16>, vector<8x384xf32> -> vector<8x384xf32>
    %48 = vector.extract_strided_slice %45 {offsets = [0, 0], sizes = [8, 128], strides = [1, 1]} : vector<8x384xf32> to vector<8x128xf32>
    %49 = vector.extract_strided_slice %47 {offsets = [0, 0], sizes = [8, 128], strides = [1, 1]} : vector<8x384xf32> to vector<8x128xf32>
    %50 = arith.addf %48, %49 : vector<8x128xf32>
    %51 = arith.negf %50 : vector<8x128xf32>
    %52 = math.exp %51 : vector<8x128xf32>
    %cst_17 = arith.constant 1.000000e+00 : f32
    %53 = vector.broadcast %cst_17 : f32 to vector<8x128xf32>
    %54 = arith.addf %53, %52 : vector<8x128xf32>
    %55 = arith.divf %53, %54 : vector<8x128xf32>
    %56 = vector.extract_strided_slice %45 {offsets = [0, 128], sizes = [8, 128], strides = [1, 1]} : vector<8x384xf32> to vector<8x128xf32>
    %57 = vector.extract_strided_slice %47 {offsets = [0, 128], sizes = [8, 128], strides = [1, 1]} : vector<8x384xf32> to vector<8x128xf32>
    %58 = arith.addf %56, %57 : vector<8x128xf32>
    %59 = arith.negf %58 : vector<8x128xf32>
    %60 = math.exp %59 : vector<8x128xf32>
    %cst_18 = arith.constant 1.000000e+00 : f32
    %61 = vector.broadcast %cst_18 : f32 to vector<8x128xf32>
    %62 = arith.addf %61, %60 : vector<8x128xf32>
    %63 = arith.divf %61, %62 : vector<8x128xf32>
    %64 = vector.extract_strided_slice %45 {offsets = [0, 256], sizes = [8, 128], strides = [1, 1]} : vector<8x384xf32> to vector<8x128xf32>
    %65 = vector.extract_strided_slice %47 {offsets = [0, 256], sizes = [8, 128], strides = [1, 1]} : vector<8x384xf32> to vector<8x128xf32>
    %66 = vector.broadcast %4 : vector<1x128xf32> to vector<8x128xf32>
    %67 = arith.addf %65, %66 : vector<8x128xf32>
    %68 = arith.mulf %55, %67 : vector<8x128xf32>
    %69 = arith.addf %64, %68 : vector<8x128xf32>
    %70 = math.tanh %69 : vector<8x128xf32>
    %cst_19 = arith.constant 1.000000e+00 : f32
    %71 = vector.broadcast %cst_19 : f32 to vector<8x128xf32>
    %72 = arith.subf %71, %63 : vector<8x128xf32>
    %73 = arith.mulf %72, %70 : vector<8x128xf32>
    %74 = arith.mulf %63, %38 : vector<8x128xf32>
    %75 = arith.addf %73, %74 : vector<8x128xf32>
    %76 = arith.index_cast %c1_i32 : i32 to index
    %c0_20 = arith.constant 0 : index
    %c0_21 = arith.constant 0 : index
    %77 = vector.load %arg5[%76, %c0_20, %c0_21] : memref<4x8x128xf32, #tpu.memory_space<vmem>>, vector<1x8x128xf32>
    %78 = vector.shape_cast %77 : vector<1x8x128xf32> to vector<8x128xf32>
    %79 = vector.shape_cast %75 : vector<8x128xf32> to vector<1x8x128xf32>
    tpu.vector_store %arg5[%76, %c0_20, %c0_21], %79 {strides = array<i32>} : memref<4x8x128xf32, #tpu.memory_space<vmem>>, vector<1x8x128xf32>,
    %c2_i32 = arith.constant 2 : i32
    %80 = arith.index_cast %c2_i32 : i32 to index
    %c0_22 = arith.constant 0 : index
    %c0_23 = arith.constant 0 : index
    %81 = vector.load %arg2[%80, %c0_22, %c0_23] : memref<4x8x384xf32, #tpu.memory_space<vmem>>, vector<1x8x384xf32>
    %82 = vector.shape_cast %81 : vector<1x8x384xf32> to vector<8x384xf32>
    %83 = arith.truncf %75 : vector<8x128xf32> to vector<8x128xbf16>
    %cst_24 = arith.constant dense<0.000000e+00> : vector<8x384xf32>
    %84 = tpu.matmul %83, %3, %cst_24 {dimension_numbers = #tpu.dot_dimension_numbers<[1], [0], [0], [1], [0, 0, 1, 1], [], []>} : vector<8x128xbf16>, vector<128x384xbf16>, vector<8x384xf32> -> vector<8x384xf32>
    %85 = vector.extract_strided_slice %82 {offsets = [0, 0], sizes = [8, 128], strides = [1, 1]} : vector<8x384xf32> to vector<8x128xf32>
    %86 = vector.extract_strided_slice %84 {offsets = [0, 0], sizes = [8, 128], strides = [1, 1]} : vector<8x384xf32> to vector<8x128xf32>
    %87 = arith.addf %85, %86 : vector<8x128xf32>
    %88 = arith.negf %87 : vector<8x128xf32>
    %89 = math.exp %88 : vector<8x128xf32>
    %cst_25 = arith.constant 1.000000e+00 : f32
    %90 = vector.broadcast %cst_25 : f32 to vector<8x128xf32>
    %91 = arith.addf %90, %89 : vector<8x128xf32>
    %92 = arith.divf %90, %91 : vector<8x128xf32>
    %93 = vector.extract_strided_slice %82 {offsets = [0, 128], sizes = [8, 128], strides = [1, 1]} : vector<8x384xf32> to vector<8x128xf32>
    %94 = vector.extract_strided_slice %84 {offsets = [0, 128], sizes = [8, 128], strides = [1, 1]} : vector<8x384xf32> to vector<8x128xf32>
    %95 = arith.addf %93, %94 : vector<8x128xf32>
    %96 = arith.negf %95 : vector<8x128xf32>
    %97 = math.exp %96 : vector<8x128xf32>
    %cst_26 = arith.constant 1.000000e+00 : f32
    %98 = vector.broadcast %cst_26 : f32 to vector<8x128xf32>
    %99 = arith.addf %98, %97 : vector<8x128xf32>
    %100 = arith.divf %98, %99 : vector<8x128xf32>
    %101 = vector.extract_strided_slice %82 {offsets = [0, 256], sizes = [8, 128], strides = [1, 1]} : vector<8x384xf32> to vector<8x128xf32>
    %102 = vector.extract_strided_slice %84 {offsets = [0, 256], sizes = [8, 128], strides = [1, 1]} : vector<8x384xf32> to vector<8x128xf32>
    %103 = vector.broadcast %4 : vector<1x128xf32> to vector<8x128xf32>
    %104 = arith.addf %102, %103 : vector<8x128xf32>
    %105 = arith.mulf %92, %104 : vector<8x128xf32>
    %106 = arith.addf %101, %105 : vector<8x128xf32>
    %107 = math.tanh %106 : vector<8x128xf32>
    %cst_27 = arith.constant 1.000000e+00 : f32
    %108 = vector.broadcast %cst_27 : f32 to vector<8x128xf32>
    %109 = arith.subf %108, %100 : vector<8x128xf32>
    %110 = arith.mulf %109, %107 : vector<8x128xf32>
    %111 = arith.mulf %100, %75 : vector<8x128xf32>
    %112 = arith.addf %110, %111 : vector<8x128xf32>
    %113 = arith.index_cast %c2_i32 : i32 to index
    %c0_28 = arith.constant 0 : index
    %c0_29 = arith.constant 0 : index
    %114 = vector.load %arg5[%113, %c0_28, %c0_29] : memref<4x8x128xf32, #tpu.memory_space<vmem>>, vector<1x8x128xf32>
    %115 = vector.shape_cast %114 : vector<1x8x128xf32> to vector<8x128xf32>
    %116 = vector.shape_cast %112 : vector<8x128xf32> to vector<1x8x128xf32>
    tpu.vector_store %arg5[%113, %c0_28, %c0_29], %116 {strides = array<i32>} : memref<4x8x128xf32, #tpu.memory_space<vmem>>, vector<1x8x128xf32>,
    %c3_i32 = arith.constant 3 : i32
    %117 = arith.index_cast %c3_i32 : i32 to index
    %c0_30 = arith.constant 0 : index
    %c0_31 = arith.constant 0 : index
    %118 = vector.load %arg2[%117, %c0_30, %c0_31] : memref<4x8x384xf32, #tpu.memory_space<vmem>>, vector<1x8x384xf32>
    %119 = vector.shape_cast %118 : vector<1x8x384xf32> to vector<8x384xf32>
    %120 = arith.truncf %112 : vector<8x128xf32> to vector<8x128xbf16>
    %cst_32 = arith.constant dense<0.000000e+00> : vector<8x384xf32>
    %121 = tpu.matmul %120, %3, %cst_32 {dimension_numbers = #tpu.dot_dimension_numbers<[1], [0], [0], [1], [0, 0, 1, 1], [], []>} : vector<8x128xbf16>, vector<128x384xbf16>, vector<8x384xf32> -> vector<8x384xf32>
    %122 = vector.extract_strided_slice %119 {offsets = [0, 0], sizes = [8, 128], strides = [1, 1]} : vector<8x384xf32> to vector<8x128xf32>
    %123 = vector.extract_strided_slice %121 {offsets = [0, 0], sizes = [8, 128], strides = [1, 1]} : vector<8x384xf32> to vector<8x128xf32>
    %124 = arith.addf %122, %123 : vector<8x128xf32>
    %125 = arith.negf %124 : vector<8x128xf32>
    %126 = math.exp %125 : vector<8x128xf32>
    %cst_33 = arith.constant 1.000000e+00 : f32
    %127 = vector.broadcast %cst_33 : f32 to vector<8x128xf32>
    %128 = arith.addf %127, %126 : vector<8x128xf32>
    %129 = arith.divf %127, %128 : vector<8x128xf32>
    %130 = vector.extract_strided_slice %119 {offsets = [0, 128], sizes = [8, 128], strides = [1, 1]} : vector<8x384xf32> to vector<8x128xf32>
    %131 = vector.extract_strided_slice %121 {offsets = [0, 128], sizes = [8, 128], strides = [1, 1]} : vector<8x384xf32> to vector<8x128xf32>
    %132 = arith.addf %130, %131 : vector<8x128xf32>
    %133 = arith.negf %132 : vector<8x128xf32>
    %134 = math.exp %133 : vector<8x128xf32>
    %cst_34 = arith.constant 1.000000e+00 : f32
    %135 = vector.broadcast %cst_34 : f32 to vector<8x128xf32>
    %136 = arith.addf %135, %134 : vector<8x128xf32>
    %137 = arith.divf %135, %136 : vector<8x128xf32>
    %138 = vector.extract_strided_slice %119 {offsets = [0, 256], sizes = [8, 128], strides = [1, 1]} : vector<8x384xf32> to vector<8x128xf32>
    %139 = vector.extract_strided_slice %121 {offsets = [0, 256], sizes = [8, 128], strides = [1, 1]} : vector<8x384xf32> to vector<8x128xf32>
    %140 = vector.broadcast %4 : vector<1x128xf32> to vector<8x128xf32>
    %141 = arith.addf %139, %140 : vector<8x128xf32>
    %142 = arith.mulf %129, %141 : vector<8x128xf32>
    %143 = arith.addf %138, %142 : vector<8x128xf32>
    %144 = math.tanh %143 : vector<8x128xf32>
    %cst_35 = arith.constant 1.000000e+00 : f32
    %145 = vector.broadcast %cst_35 : f32 to vector<8x128xf32>
    %146 = arith.subf %145, %137 : vector<8x128xf32>
    %147 = arith.mulf %146, %144 : vector<8x128xf32>
    %148 = arith.mulf %137, %112 : vector<8x128xf32>
    %149 = arith.addf %147, %148 : vector<8x128xf32>
    %150 = arith.index_cast %c3_i32 : i32 to index
    %c0_36 = arith.constant 0 : index
    %c0_37 = arith.constant 0 : index
    %151 = vector.load %arg5[%150, %c0_36, %c0_37] : memref<4x8x128xf32, #tpu.memory_space<vmem>>, vector<1x8x128xf32>
    %152 = vector.shape_cast %151 : vector<1x8x128xf32> to vector<8x128xf32>
    %153 = vector.shape_cast %149 : vector<8x128xf32> to vector<1x8x128xf32>
    tpu.vector_store %arg5[%150, %c0_36, %c0_37], %153 {strides = array<i32>} : memref<4x8x128xf32, #tpu.memory_space<vmem>>, vector<1x8x128xf32>,
    %c4_i32 = arith.constant 4 : i32
    %c0_38 = arith.constant 0 : index
    %c0_39 = arith.constant 0 : index
    %154 = vector.load %arg6[%c0_38, %c0_39] : memref<8x128xf32, #tpu.memory_space<vmem>>, vector<8x128xf32>
    tpu.vector_store %arg6[%c0_38, %c0_39], %149 {strides = array<i32>} : memref<8x128xf32, #tpu.memory_space<vmem>>, vector<8x128xf32>,
    return
  }
  func.func @transform_0(%arg0: i32, %arg1: i32) -> (i32, i32, i32) {
    %c0_i32 = arith.constant 0 : i32
    %c0_i32_0 = arith.constant 0 : i32
    return %arg1, %arg0, %c0_i32 : i32, i32, i32
  }
  func.func @transform_1(%arg0: i32, %arg1: i32) -> (i32, i32) {
    %c0_i32 = arith.constant 0 : i32
    %c0_i32_0 = arith.constant 0 : i32
    %c0_i32_1 = arith.constant 0 : i32
    return %c0_i32, %c0_i32_0 : i32, i32
  }
  func.func @transform_2(%arg0: i32, %arg1: i32) -> (i32, i32) {
    %c0_i32 = arith.constant 0 : i32
    %c0_i32_0 = arith.constant 0 : i32
    %c0_i32_1 = arith.constant 0 : i32
    return %c0_i32, %c0_i32_0 : i32, i32
  }
  func.func @transform_3(%arg0: i32, %arg1: i32) -> (i32, i32, i32) {
    %c0_i32 = arith.constant 0 : i32
    %c0_i32_0 = arith.constant 0 : i32
    return %arg1, %arg0, %c0_i32 : i32, i32, i32
  }
}

</mosaic_0001>

<bundles_post_ra>
// kernel: rnn_listener_forward.1
= control target key start
LH: loop header
LB: loop body
LE: loop exit
PB: predicated region body
PF: predicated region fallthrough
CT: control target
= control target key end

     0   :  { %s1230_s12 = smov 0   ;;  %s1232_s13 = smov 0   ;;  %s1569_s0 = inlined_call_operand.vmem [shape: f32[8,8,384], index: 0, kind: input, shape index: {}]   ;;  %s1570_s1 = inlined_call_operand.vmem [shape: bf16[128,384], index: 1, kind: input, shape index: {}]   ;;  %s1571_s2 = inlined_call_operand.vmem [shape: f32[1,128], index: 2, kind: input, shape index: {}]   ;;  %s1572_s3 = inlined_call_operand.vmem [shape: f32[8,8,128], index: 3, kind: output, shape index: {}]  }
   0x1   :  { %s1234_s14 = smov 0  }
   0x2 LB: > { %s22_s15 = sadd.s32 1, %s1200_s13  ;;  %p912_p0 = scmp.ge.s32.totalorder %s1204_s14, 1  ;;  %s1204_s14 = sphi %s1234_s14, %s13_s14   ;;  %s1200_s13 = sphi %s1232_s13, %s1574_s13   ;;  %s1196_s12 = sphi %s1230_s12, %s1573_s12  }
   0x3   : > { %p23_p1 = scmp.ge.s32.totalorder %s22_s15, 2  ;;  %p159_p2 = scmp.lt.s32.totalorder %s1204_s14, 3 }
   0x5   : > { %s1576_s15 = smov (%p23_p1, %s22_s15), 0  ;;  %p160_p3 = pnand %p912_p0, %p159_p2 }
   0x6   : > { %s913_s16 = sshll.u32 (!%p160_p3), %s1196_s12, 2  ;;  %p917_p5 = scmp.ne.s32.totalorder (!%p160_p3), %s1196_s12, 0 }
   0x7   : > { %163 = sbr.rel (%p160_p3) target bundleno = 1098 (0x44a), region = 32  ;;  %p192_p4 = scmp.lt.s32.totalorder (!%p160_p3), %s913_s16, 7 }
   0xe   : > { %s1578_s16 = smov (!%p192_p4, %s913_s16), 7  ;;  %215 = sbr.rel (%p917_p5) target bundleno = 21 (0x15), region = 36 }
   0xf   : > { %s1081_s17 = smul.u32 24, %s1578_s16  ;;  %s916_s18 = sshll.u32 %s1578_s16, 3  ;;  %v1206_v0 = vmov (!%p917_p5), 0.0  }
  0x10   : > { %s1251_s21 = scalar_lea.vmem %s1572_s3, %s916_s18  ;;  %216 = vst [vmem:[#allocation2] sm:$0xff] (!%p917_p5), %v1206_v0 }
  0x11   : > { %s1256_s24 = scalar_lea.vmem %s1569_s0, %s1081_s17 }
  0x15 PF: > { %v1261_v1 = vld [vmem:[%s1570_s1 + $0x4] ss:$12 sps:$4 sm:$0xff]   ;;  %v1266_v2 = vld [vmem:[%s1570_s1] ss:$12 sps:$4 sm:$0xff]   ;;  %v1207_v3 = vmov 0.0   ;;  %v1208_v4 = vmov 0  }
  0x16   : > { %1001 = vmatprep.subr.bf16.mxu1 %v1207_v3  ;;  %415 = vmatprep.mubr.bf16.mxu0 %v1208_v4  ;;  %v1274_v5 = vld [vmem:[%s1570_s1 + $0x1c] ss:$12 sps:$4 sm:$0xff]   ;;  %vm1209_vm0 = vmmov 0   ;;  %v1282_v6 = vld [vmem:[%s1570_s1 + $0x18] ss:$12 sps:$4 sm:$0xff]   ;;  %v253_v50 = vld [vmem:[%s1256_s24 + $0x10] sm:$0xff] }
  0x17   : > { %383 = vmatprep.subr.bf16.mxu0 %v1261_v1  ;;  %1017 = vmatprep.mubr.msk.bf16.mxu1 %vm1209_vm0, %v1207_v3  ;;  %v1288_v7 = vld [vmem:[%s1570_s1 + $0x34] ss:$12 sps:$4 sm:$0xff]   ;;  %v1294_v8 = vld [vmem:[%s1570_s1 + $0x30] ss:$12 sps:$4 sm:$0xff]   ;;  %v1300_v9 = vld [vmem:[%s1570_s1 + $0x4c] ss:$12 sps:$4 sm:$0xff]  }
  0x18   : > { %384 = vmatpush1.bf16.msra.mxu0 %v1266_v2  ;;  %v1305_v10 = vld [vmem:[%s1570_s1 + $0x8] ss:$12 sps:$4 sm:$0xff]   ;;  %v1318_v12 = vld [vmem:[%s1570_s1 + $0x64] ss:$12 sps:$4 sm:$0xff]   ;;  %v1324_v13 = vld [vmem:[%s1570_s1 + $0x20] ss:$12 sps:$4 sm:$0xff]  }
  0x19   : > { %385 = vmatprep.subr.bf16.mxu0 %v1274_v5  ;;  %v1311_v11 = vld [vmem:[%s1570_s1 + $0x48] ss:$12 sps:$4 sm:$0xff]   ;;  %1002 = vmatpush3.bf16.msra.mxu1 %v1305_v10  ;;  %v1329_v14 = vld [vmem:[%s1570_s1 + $0x60] ss:$12 sps:$4 sm:$0xff]   ;;  %v1336_v15 = vld [vmem:[%s1570_s1 + $0x38] ss:$12 sps:$4 sm:$0xff]  }
  0x1a   : > { %1003 = vmatprep.subr.bf16.mxu1 %v1207_v3  ;;  %v1342_v16 = vld [vmem:[%s1570_s1 + $0x7c] ss:$12 sps:$4 sm:$0xff]   ;;  %v1349_v17 = vld [vmem:[%s1570_s1 + $0x78] ss:$12 sps:$4 sm:$0xff]   ;;  %v1361_v19 = vld [vmem:[%s1570_s1 + $0x94] ss:$12 sps:$4 sm:$0xff]  }
  0x1b   : > { %v1355_v18 = vld [vmem:[%s1570_s1 + $0x50] ss:$12 sps:$4 sm:$0xff]   ;;  %v1374_v21 = vld [vmem:[%s1570_s1 + $0x68] ss:$12 sps:$4 sm:$0xff]   ;;  %v1380_v22 = vld [vmem:[%s1570_s1 + $0xac] ss:$12 sps:$4 sm:$0xff]  }
  0x1c   : > { %386 = vmatpush1.bf16.msra.mxu0 %v1282_v6  ;;  %v1368_v20 = vld [vmem:[%s1570_s1 + $0x90] ss:$12 sps:$4 sm:$0xff]   ;;  %v1387_v23 = vld [vmem:[%s1570_s1 + $0xa8] ss:$12 sps:$4 sm:$0xff]   ;;  %v1389_v24 = vld [vmem:[#allocation2] sm:$0xff] }
  0x1d   : > { %387 = vmatprep.subr.bf16.mxu0 %v1288_v7  ;;  %1004 = vmatpush3.bf16.msra.mxu1 %v1324_v13  ;;  %v1395_v25 = vld [vmem:[%s1570_s1 + $0x80] ss:$12 sps:$4 sm:$0xff]   ;;  %v254_v26 = vpack.c.bf16 %v1389_v24, %v1389_v24  ;;  %v1406_v27 = vld [vmem:[%s1570_s1 + $0x98] ss:$12 sps:$4 sm:$0xff]   ;;  %v1414_v28 = vld [vmem:[%s1570_s1 + $0xb0] ss:$12 sps:$4 sm:$0xff]  }
  0x1e   : > { %1005 = vmatprep.subr.bf16.mxu1 %v1207_v3  ;;  %v251_v29 = vld [vmem:[%s1256_s24] sm:$0xff]  ;;  %v252_v32 = vld [vmem:[%s1256_s24 + $0x8] sm:$0xff]  ;;  %v945_v60 = vld [vmem:[%s1256_s24 + $0x18] sm:$0xff] }
  0x1f   : > { %v1459_v46 = vld [vmem:[%s1571_s2] ss:$0 sm:$0xff] }
  0x20   : > { %388 = vmatpush1.bf16.msra.mxu0 %v1294_v8  ;;  %v946_v0 = vld [vmem:[%s1256_s24 + $0x20] sm:$0xff] }
  0x21   : > { %389 = vmatprep.subr.bf16.mxu0 %v1300_v9  ;;  %1006 = vmatpush3.bf16.msra.mxu1 %v1336_v15 }
  0x22   : > { %1007 = vmatprep.subr.bf16.mxu1 %v1207_v3 }
  0x24   : > { %390 = vmatpush1.bf16.msra.mxu0 %v1311_v11 }
  0x25   : > { %391 = vmatprep.subr.bf16.mxu0 %v1318_v12  ;;  %1008 = vmatpush3.bf16.msra.mxu1 %v1355_v18 }
  0x26   : > { %1009 = vmatprep.subr.bf16.mxu1 %v1207_v3 }
  0x28   : > { %392 = vmatpush1.bf16.msra.mxu0 %v1329_v14 }
  0x29   : > { %393 = vmatprep.subr.bf16.mxu0 %v1342_v16  ;;  %1010 = vmatpush3.bf16.msra.mxu1 %v1374_v21 }
  0x2a   : > { %1011 = vmatprep.subr.bf16.mxu1 %v1207_v3 }
  0x2c   : > { %394 = vmatpush1.bf16.msra.mxu0 %v1349_v17 }
  0x2d   : > { %395 = vmatprep.subr.bf16.mxu0 %v1361_v19  ;;  %1012 = vmatpush3.bf16.msra.mxu1 %v1395_v25 }
  0x2e   : > { %1013 = vmatprep.subr.bf16.mxu1 %v1207_v3 }
  0x30   : > { %396 = vmatpush1.bf16.msra.mxu0 %v1368_v20 }
  0x31   : > { %397 = vmatprep.subr.bf16.mxu0 %v1380_v22  ;;  %1014 = vmatpush3.bf16.msra.mxu1 %v1406_v27 }
  0x32   : > { %1015 = vmatprep.subr.bf16.mxu1 %v1207_v3 }
  0x34   : > { %398 = vmatpush1.bf16.msra.mxu0 %v1387_v23 }
  0x35   : > { %498 = vmatprep.subr.bf16.mxu0 %v1261_v1  ;;  %1016 = vmatpush3.bf16.msra.mxu1 %v1414_v28 }
  0x36   : > { %1021 = vmatprep.subr.bf16.mxu1 %v1207_v3 }
  0x37   : > { %416 = vmatmul.mubr.bf16.vlgmr.msra.gmra.mrb[0].mxu0 %v254_v26 }
  0x38   : > { %499 = vmatpush1.bf16.msra.mxu0 %v1266_v2  ;;  %530 = vmatprep.mubr.bf16.mxu0 %v1208_v4 }
  0x39   : > { %500 = vmatprep.subr.bf16.mxu0 %v1274_v5  ;;  %1018 = vmatmul.mubr.bf16.vlgmr.msra.gmra.mrb[0].mxu1 %v254_v26 }
  0x3a   : > { %1022 = vmatpush3.bf16.msra.mxu1 %v1305_v10  ;;  %1037 = vmatprep.mubr.msk.bf16.mxu1 %vm1209_vm0, %v1207_v3 }
  0x3b   : > { %1023 = vmatprep.subr.bf16.mxu1 %v1207_v3 }
  0x3c   : > { %501 = vmatpush1.bf16.msra.mxu0 %v1282_v6 }
  0x3d   : > { %502 = vmatprep.subr.bf16.mxu0 %v1288_v7 }
  0x3e   : > { %1024 = vmatpush3.bf16.msra.mxu1 %v1324_v13 }
  0x3f   : > { %1025 = vmatprep.subr.bf16.mxu1 %v1207_v3 }
  0x40   : > { %503 = vmatpush1.bf16.msra.mxu0 %v1294_v8 }
  0x41   : > { %504 = vmatprep.subr.bf16.mxu0 %v1300_v9 }
  0x42   : > { %1026 = vmatpush3.bf16.msra.mxu1 %v1336_v15 }
  0x43   : > { %1027 = vmatprep.subr.bf16.mxu1 %v1207_v3 }
  0x44   : > { %505 = vmatpush1.bf16.msra.mxu0 %v1311_v11 }
  0x45   : > { %506 = vmatprep.subr.bf16.mxu0 %v1318_v12 }
  0x46   : > { %1028 = vmatpush3.bf16.msra.mxu1 %v1355_v18 }
  0x47   : > { %1029 = vmatprep.subr.bf16.mxu1 %v1207_v3 }
  0x48   : > { %507 = vmatpush1.bf16.msra.mxu0 %v1329_v14 }
  0x49   : > { %508 = vmatprep.subr.bf16.mxu0 %v1342_v16 }
  0x4a   : > { %1030 = vmatpush3.bf16.msra.mxu1 %v1374_v21 }
  0x4b   : > { %1031 = vmatprep.subr.bf16.mxu1 %v1207_v3 }
  0x4c   : > { %509 = vmatpush1.bf16.msra.mxu0 %v1349_v17 }
  0x4d   : > { %510 = vmatprep.subr.bf16.mxu0 %v1361_v19 }
  0x4e   : > { %1032 = vmatpush3.bf16.msra.mxu1 %v1395_v25 }
  0x4f   : > { %1033 = vmatprep.subr.bf16.mxu1 %v1207_v3 }
  0x50   : > { %511 = vmatpush1.bf16.msra.mxu0 %v1368_v20 }
  0x51   : > { %512 = vmatprep.subr.bf16.mxu0 %v1380_v22 }
  0x52   : > { %1034 = vmatpush3.bf16.msra.mxu1 %v1406_v27 }
  0x53   : > { %1035 = vmatprep.subr.bf16.mxu1 %v1207_v3 }
  0x54   : > { %513 = vmatpush1.bf16.msra.mxu0 %v1387_v23 }
  0x55   : > { %608 = vmatprep.subr.bf16.mxu0 %v1261_v1 }
  0x56   : > { %1036 = vmatpush3.bf16.msra.mxu1 %v1414_v28 }
  0x57   : > { %1041 = vmatprep.subr.bf16.mxu1 %v1207_v3 }
 0x10a   : > { %v417_v30 = vpop.f32.mrb[0].mxu0 }
 0x10b   : > { %v464_v31 = vadd.f32 %v417_v30, %v251_v29  ;;  %v419_v33 = vpop.f32.mrb[1].mxu0 }
 0x10c   : > { %v421_v34 = vpop.f32.mrb[2].mxu0  ;;  %v471_v37 = vadd.f32 %v419_v33, %v252_v32  ;;  %v458_v39 = vpop.f32.mrb[0].mxu1 }
 0x10d   : > { %v942_v35 = vmul.f32 -1.442695, %v464_v31  ;;  %v422_v36 = vpop.f32.mrb[3].mxu0  ;;  %v1019_v40 = vpop.f32.mrb[1].mxu1  ;;  %v484_v48 = vadd.f32 %v1459_v46, %v458_v39 }
 0x10e   : > { %v943_v38 = vmul.f32 -1.442695, %v471_v37  ;;  %v461_v41 = vpop.f32.mrb[2].mxu1 }
 0x10f   : > { %1142 = vpow2.f32 %v942_v35  ;;  %v1020_v42 = vpop.f32.mrb[3].mxu1  ;;  %v947_v41 = vld [vmem:[%s1256_s24 + $0x28] sm:$0xff] }
 0x110   : > { %1144 = vpow2.f32 %v943_v38 }
 0x119   : > { %v1143_v43 = vpop.eup %1142 }
 0x11a   : > { %v468_v44 = vadd.f32 1.0, %v1143_v43  ;;  %v1145_v45 = vpop.eup %1144 }
 0x11b   : > { %v475_v47 = vadd.f32 1.0, %v1145_v45 }
 0x11c   : > { %1146 = vrcp.f32 %v468_v44 }
 0x11d   : > { %1148 = vrcp.f32 %v475_v47 }
 0x126   : > { %v1147_v49 = vpop.eup %1146 }
 0x127   : > { %v485_v51 = vmul.f32 %v1147_v49, %v484_v48  ;;  %v1149_v53 = vpop.eup %1148 }
 0x128   : > { %v488_v54 = vsub.f32 1.0, %v1149_v53  ;;  %v490_v57 = vmul.f32 %v1149_v53, %v1389_v24 }
 0x129   : > { %v486_v52 = vadd.f32 %v485_v51, %v253_v50 }
 0x12b   : > { %1150 = vtanh.f32 %v486_v52 }
 0x135   : > { %v1151_v55 = vpop.eup %1150 }
 0x136   : > { %v489_v56 = vmul.f32 %v1151_v55, %v488_v54 }
 0x138   : > { %v1464_v58 = vadd.f32 %v490_v57, %v489_v56  ;;  %v957_v57 = vld [vmem:[%s1256_s24 + $0x48] sm:$0xff] }
 0x13a   : > { %492 = vst [vmem:[%s1251_s21] sm:$0xff] %v1464_v58  ;;  %v497_v59 = vpack.c.bf16 %v1464_v58, %v1464_v58 }
 0x13c   : > { %531 = vmatmul.mubr.bf16.vlgmr.msra.gmra.mrb[4].mxu0 %v497_v59  ;;  %1038 = vmatmul.mubr.bf16.vlgmr.msra.gmra.mrb[4].mxu1 %v497_v59 }
 0x13d   : > { %609 = vmatpush1.bf16.msra.mxu0 %v1266_v2  ;;  %1042 = vmatpush3.bf16.msra.mxu1 %v1305_v10 }
 0x13e   : > { %610 = vmatprep.subr.bf16.mxu0 %v1274_v5  ;;  %1043 = vmatprep.subr.bf16.mxu1 %v1207_v3 }
 0x13f   : > { %640 = vmatprep.mubr.bf16.mxu0 %v1208_v4  ;;  %1057 = vmatprep.mubr.msk.bf16.mxu1 %vm1209_vm0, %v1207_v3 }
 0x141   : > { %611 = vmatpush1.bf16.msra.mxu0 %v1282_v6  ;;  %1044 = vmatpush3.bf16.msra.mxu1 %v1324_v13 }
 0x142   : > { %612 = vmatprep.subr.bf16.mxu0 %v1288_v7  ;;  %1045 = vmatprep.subr.bf16.mxu1 %v1207_v3 }
 0x145   : > { %613 = vmatpush1.bf16.msra.mxu0 %v1294_v8  ;;  %1046 = vmatpush3.bf16.msra.mxu1 %v1336_v15 }
 0x146   : > { %614 = vmatprep.subr.bf16.mxu0 %v1300_v9  ;;  %1047 = vmatprep.subr.bf16.mxu1 %v1207_v3 }
 0x149   : > { %615 = vmatpush1.bf16.msra.mxu0 %v1311_v11  ;;  %1048 = vmatpush3.bf16.msra.mxu1 %v1355_v18 }
 0x14a   : > { %616 = vmatprep.subr.bf16.mxu0 %v1318_v12  ;;  %1049 = vmatprep.subr.bf16.mxu1 %v1207_v3 }
 0x14d   : > { %617 = vmatpush1.bf16.msra.mxu0 %v1329_v14  ;;  %1050 = vmatpush3.bf16.msra.mxu1 %v1374_v21 }
 0x14e   : > { %618 = vmatprep.subr.bf16.mxu0 %v1342_v16  ;;  %1051 = vmatprep.subr.bf16.mxu1 %v1207_v3 }
 0x151   : > { %619 = vmatpush1.bf16.msra.mxu0 %v1349_v17  ;;  %1052 = vmatpush3.bf16.msra.mxu1 %v1395_v25 }
 0x152   : > { %620 = vmatprep.subr.bf16.mxu0 %v1361_v19  ;;  %1053 = vmatprep.subr.bf16.mxu1 %v1207_v3 }
 0x155   : > { %621 = vmatpush1.bf16.msra.mxu0 %v1368_v20  ;;  %1054 = vmatpush3.bf16.msra.mxu1 %v1406_v27 }
 0x156   : > { %622 = vmatprep.subr.bf16.mxu0 %v1380_v22  ;;  %1055 = vmatprep.subr.bf16.mxu1 %v1207_v3 }
 0x159   : > { %623 = vmatpush1.bf16.msra.mxu0 %v1387_v23  ;;  %1056 = vmatpush3.bf16.msra.mxu1 %v1414_v28 }
 0x15a   : > { %718 = vmatprep.subr.bf16.mxu0 %v1261_v1  ;;  %1061 = vmatprep.subr.bf16.mxu1 %v1207_v3 }
 0x20f   : > { %v532_v61 = vpop.f32.mrb[4].mxu0  ;;  %v573_v62 = vpop.f32.mrb[4].mxu1 }
 0x210   : > { %v579_v63 = vadd.f32 %v945_v60, %v532_v61  ;;  %v534_v24 = vpop.f32.mrb[5].mxu0  ;;  %v1039_v26 = vpop.f32.mrb[5].mxu1  ;;  %v593_v39 = vadd.f32 %v1459_v46, %v573_v62  ;;  %v958_v61 = vld [vmem:[%s1256_s24 + $0x50] sm:$0xff] }
 0x211   : > { %v536_v29 = vpop.f32.mrb[6].mxu0  ;;  %v576_v30 = vpop.f32.mrb[6].mxu1  ;;  %v586_v34 = vadd.f32 %v946_v0, %v534_v24 }
 0x212   : > { %v948_v31 = vmul.f32 -1.442695, %v579_v63  ;;  %v537_v32 = vpop.f32.mrb[7].mxu0  ;;  %v1040_v33 = vpop.f32.mrb[7].mxu1 }
 0x213   : > { %v949_v35 = vmul.f32 -1.442695, %v586_v34 }
 0x214   : > { %1152 = vpow2.f32 %v948_v31 }
 0x215   : > { %1154 = vpow2.f32 %v949_v35 }
 0x21e   : > { %v1153_v1 = vpop.eup %1152 }
 0x21f   : > { %v583_v36 = vadd.f32 1.0, %v1153_v1  ;;  %v1155_v37 = vpop.eup %1154 }
 0x220   : > { %v590_v38 = vadd.f32 1.0, %v1155_v37 }
 0x221   : > { %1156 = vrcp.f32 %v583_v36 }
 0x222   : > { %1158 = vrcp.f32 %v590_v38  ;;  %v959_v38 = vld [vmem:[%s1256_s24 + $0x58] sm:$0xff] }
 0x22b   : > { %v1157_v40 = vpop.eup %1156 }
 0x22c   : > { %v594_v42 = vmul.f32 %v1157_v40, %v593_v39  ;;  %v1159_v44 = vpop.eup %1158 }
 0x22d   : > { %v597_v45 = vsub.f32 1.0, %v1159_v44  ;;  %v599_v49 = vmul.f32 %v1159_v44, %v1464_v58 }
 0x22e   : > { %v595_v43 = vadd.f32 %v947_v41, %v594_v42 }
 0x230   : > { %1160 = vtanh.f32 %v595_v43 }
 0x23a   : > { %v1161_v47 = vpop.eup %1160 }
 0x23b   : > { %v598_v48 = vmul.f32 %v1161_v47, %v597_v45 }
 0x23d   : > { %v1510_v50 = vadd.f32 %v599_v49, %v598_v48 }
 0x23f   : > { %950 = vst [vmem:[%s1251_s21 + $0x8] sm:$0xff] %v1510_v50  ;;  %v607_v51 = vpack.c.bf16 %v1510_v50, %v1510_v50 }
 0x241   : > { %641 = vmatmul.mubr.bf16.vlgmr.msra.gmra.mrb[8].mxu0 %v607_v51  ;;  %1058 = vmatmul.mubr.bf16.vlgmr.msra.gmra.mrb[8].mxu1 %v607_v51 }
 0x242   : > { %719 = vmatpush1.bf16.msra.mxu0 %v1266_v2  ;;  %1062 = vmatpush3.bf16.msra.mxu1 %v1305_v10  ;;  %v951_v2 = vld [vmem:[%s1256_s24 + $0x30] sm:$0xff] }
 0x243   : > { %720 = vmatprep.subr.bf16.mxu0 %v1274_v5  ;;  %1063 = vmatprep.subr.bf16.mxu1 %v1207_v3 }
 0x244   : > { %750 = vmatprep.mubr.bf16.mxu0 %v1208_v4  ;;  %1077 = vmatprep.mubr.msk.bf16.mxu1 %vm1209_vm0, %v1207_v3 }
 0x246   : > { %721 = vmatpush1.bf16.msra.mxu0 %v1282_v6  ;;  %1064 = vmatpush3.bf16.msra.mxu1 %v1324_v13 }
 0x247   : > { %722 = vmatprep.subr.bf16.mxu0 %v1288_v7  ;;  %1065 = vmatprep.subr.bf16.mxu1 %v1207_v3  ;;  %v952_v7 = vld [vmem:[%s1256_s24 + $0x38] sm:$0xff] }
 0x24a   : > { %723 = vmatpush1.bf16.msra.mxu0 %v1294_v8  ;;  %1066 = vmatpush3.bf16.msra.mxu1 %v1336_v15 }
 0x24b   : > { %724 = vmatprep.subr.bf16.mxu0 %v1300_v9  ;;  %1067 = vmatprep.subr.bf16.mxu1 %v1207_v3 }
 0x24e   : > { %725 = vmatpush1.bf16.msra.mxu0 %v1311_v11  ;;  %1068 = vmatpush3.bf16.msra.mxu1 %v1355_v18 }
 0x24f   : > { %726 = vmatprep.subr.bf16.mxu0 %v1318_v12  ;;  %1069 = vmatprep.subr.bf16.mxu1 %v1207_v3 }
 0x252   : > { %727 = vmatpush1.bf16.msra.mxu0 %v1329_v14  ;;  %1070 = vmatpush3.bf16.msra.mxu1 %v1374_v21 }
 0x253   : > { %728 = vmatprep.subr.bf16.mxu0 %v1342_v16  ;;  %1071 = vmatprep.subr.bf16.mxu1 %v1207_v3 }
 0x256   : > { %729 = vmatpush1.bf16.msra.mxu0 %v1349_v17  ;;  %1072 = vmatpush3.bf16.msra.mxu1 %v1395_v25 }
 0x257   : > { %730 = vmatprep.subr.bf16.mxu0 %v1361_v19  ;;  %1073 = vmatprep.subr.bf16.mxu1 %v1207_v3 }
 0x25a   : > { %731 = vmatpush1.bf16.msra.mxu0 %v1368_v20  ;;  %1074 = vmatpush3.bf16.msra.mxu1 %v1406_v27 }
 0x25b   : > { %732 = vmatprep.subr.bf16.mxu0 %v1380_v22  ;;  %1075 = vmatprep.subr.bf16.mxu1 %v1207_v3  ;;  %v953_v22 = vld [vmem:[%s1256_s24 + $0x40] sm:$0xff] }
 0x25e   : > { %733 = vmatpush1.bf16.msra.mxu0 %v1387_v23  ;;  %1076 = vmatpush3.bf16.msra.mxu1 %v1414_v28 }
 0x314   : > { %v642_v4 = vpop.f32.mrb[8].mxu0  ;;  %v683_v5 = vpop.f32.mrb[8].mxu1 }
 0x315   : > { %v689_v6 = vadd.f32 %v951_v2, %v642_v4  ;;  %v644_v8 = vpop.f32.mrb[9].mxu0  ;;  %v1059_v9 = vpop.f32.mrb[9].mxu1  ;;  %v703_v20 = vadd.f32 %v1459_v46, %v683_v5 }
 0x316   : > { %v646_v10 = vpop.f32.mrb[10].mxu0  ;;  %v686_v11 = vpop.f32.mrb[10].mxu1  ;;  %v696_v15 = vadd.f32 %v952_v7, %v644_v8 }
 0x317   : > { %v954_v12 = vmul.f32 -1.442695, %v689_v6  ;;  %v647_v13 = vpop.f32.mrb[11].mxu0  ;;  %v1060_v14 = vpop.f32.mrb[11].mxu1 }
 0x318   : > { %v955_v3 = vmul.f32 -1.442695, %v696_v15 }
 0x319   : > { %1162 = vpow2.f32 %v954_v12 }
 0x31a   : > { %1164 = vpow2.f32 %v955_v3 }
 0x323   : > { %v1163_v16 = vpop.eup %1162 }
 0x324   : > { %v693_v17 = vadd.f32 1.0, %v1163_v16  ;;  %v1165_v18 = vpop.eup %1164 }
 0x325   : > { %v700_v19 = vadd.f32 1.0, %v1165_v18 }
 0x326   : > { %1166 = vrcp.f32 %v693_v17 }
 0x327   : > { %1168 = vrcp.f32 %v700_v19 }
 0x330   : > { %v1167_v21 = vpop.eup %1166 }
 0x331   : > { %v704_v23 = vmul.f32 %v1167_v21, %v703_v20  ;;  %v1169_v27 = vpop.eup %1168 }
 0x332   : > { %v707_v28 = vsub.f32 1.0, %v1169_v27  ;;  %v709_v54 = vmul.f32 %v1169_v27, %v1510_v50 }
 0x333   : > { %v705_v25 = vadd.f32 %v953_v22, %v704_v23 }
 0x335   : > { %1170 = vtanh.f32 %v705_v25 }
 0x33f   : > { %v1171_v52 = vpop.eup %1170 }
 0x340   : > { %v708_v53 = vmul.f32 %v1171_v52, %v707_v28 }
 0x342   : > { %v710_v55 = vadd.f32 %v709_v54, %v708_v53 }
 0x344   : > { %956 = vst [vmem:[%s1251_s21 + $0x10] sm:$0xff] %v710_v55  ;;  %v717_v56 = vpack.c.bf16 %v710_v55, %v710_v55 }
 0x346   : > { %751 = vmatmul.mubr.bf16.vlgmr.msra.gmra.mrb[12].mxu0 %v717_v56  ;;  %1078 = vmatmul.mubr.bf16.vlgmr.msra.gmra.mrb[12].mxu1 %v717_v56 }
 0x419   : > { %v752_v58 = vpop.f32.mrb[12].mxu0  ;;  %v793_v59 = vpop.f32.mrb[12].mxu1 }
 0x41a   : > { %v799_v60 = vadd.f32 %v957_v57, %v752_v58  ;;  %v754_v62 = vpop.f32.mrb[13].mxu0  ;;  %v1079_v63 = vpop.f32.mrb[13].mxu1  ;;  %v813_v36 = vadd.f32 %v1459_v46, %v793_v59 }
 0x41b   : > { %v756_v0 = vpop.f32.mrb[14].mxu0  ;;  %v796_v24 = vpop.f32.mrb[14].mxu1  ;;  %v806_v31 = vadd.f32 %v958_v61, %v754_v62 }
 0x41c   : > { %v960_v26 = vmul.f32 -1.442695, %v799_v60  ;;  %v757_v29 = vpop.f32.mrb[15].mxu0  ;;  %v1080_v30 = vpop.f32.mrb[15].mxu1 }
 0x41d   : > { %v961_v32 = vmul.f32 -1.442695, %v806_v31 }
 0x41e   : > { %1172 = vpow2.f32 %v960_v26 }
 0x41f   : > { %1174 = vpow2.f32 %v961_v32 }
 0x428   : > { %v1173_v33 = vpop.eup %1172 }
 0x429   : > { %v803_v34 = vadd.f32 1.0, %v1173_v33  ;;  %v1175_v35 = vpop.eup %1174 }
 0x42a   : > { %v810_v1 = vadd.f32 1.0, %v1175_v35 }
 0x42b   : > { %1176 = vrcp.f32 %v803_v34 }
 0x42c   : > { %1178 = vrcp.f32 %v810_v1 }
 0x435   : > { %v1177_v37 = vpop.eup %1176 }
 0x436   : > { %v814_v39 = vmul.f32 %v1177_v37, %v813_v36  ;;  %v1179_v41 = vpop.eup %1178 }
 0x437   : > { %v817_v42 = vsub.f32 1.0, %v1179_v41  ;;  %v819_v45 = vmul.f32 %v1179_v41, %v710_v55 }
 0x438   : > { %v815_v40 = vadd.f32 %v959_v38, %v814_v39 }
 0x43a   : > { %1180 = vtanh.f32 %v815_v40 }
 0x444   : > { %v1181_v43 = vpop.eup %1180 }
 0x445   : > { %v818_v44 = vmul.f32 %v1181_v43, %v817_v42 }
 0x447   : > { %v820_v47 = vadd.f32 %v819_v45, %v818_v44 }
 0x449   : > { %962 = vst [vmem:[%s1251_s21 + $0x18] sm:$0xff] %v820_v47  ;;  %823 = vst [vmem:[#allocation2] sm:$0xff] %v820_v47 }
 0x44a PF: > { %s13_s14 = sadd.s32 1, %s1204_s14   ;;  %s1573_s12 = smov %s1200_s13 }
 0x44b   : > { %p10_p6 = scmp.ge.s32.totalorder %s13_s14, 4   ;;  %s1574_s13 = smov %s1576_s15 }
 0x44d   :  { %12 = sbr.rel (!%p10_p6) target bundleno = 2 (0x2), region = 72 }

</bundles_post_ra>
